<compile_context>
chip_gen: v5e
topology: v5e:2x2
jax: 0.10.0
libtpu: 0.0.40
codegen_flags: <defaults>
</compile_context>

<pallas_src>
import jax
import jax.numpy as jnp
from jax import lax
from jax.experimental import pallas as pl
from jax.experimental.pallas import tpu as pltpu

EPS = 1e-5  # BatchNorm1d default eps


def _make_kernel(N, F, TE, E, eps=EPS):
    """Build the TSPConv kernel closed over the static problem sizes."""
    F2, F3, F4, F5 = 2 * F, 3 * F, 4 * F, 5 * F
    inv_E = 1.0 / float(E)

    def kernel(ef_ref, src_ref, dst_ref, nf_ref, maxpd_ref, w_ref, bnp_ref,
               new_h_ref, new_e_ref, tab_ref, acc_ref, ebn_ref):
        p = pl.program_id(0)   # phase: 0 = accumulate, 1 = emit edge output
        t = pl.program_id(1)   # edge tile
        f32 = jnp.float32

        # ------------- one-time init (first grid step) -------------
        @pl.when(jnp.logical_and(p == 0, t == 0))
        def _init():
            nf = nf_ref[...]
            # Fused node matmul: [W0h | W3h | W1h] in one MXU call.
            tab_ref[:, 0:F3] = jnp.dot(nf, w_ref[:, 0:F3],
                                       preferred_element_type=f32)
            tab_ref[:, F3:F4] = maxpd_ref[...]        # per-destination softmax max
            acc_ref[...] = jnp.zeros_like(acc_ref)    # [sumpd | numer]
            ebn_ref[...] = jnp.zeros_like(ebn_ref)    # [sum ; sum of squares]

        # ------------- per-tile shared work (both phases) -------------
        ef = ef_ref[...]                               # [TE, F]
        src = src_ref[...]                             # [TE, 1] int32
        dst = dst_ref[...]                             # [TE, 1] int32
        node_ids = lax.broadcasted_iota(jnp.int32, (TE, N), 1)
        edge_ids = lax.broadcasted_iota(jnp.int32, (TE, 1), 0)
        valid = ((t * TE + edge_ids) < E).astype(f32)          # mask padded edges
        oh_src = (node_ids == src).astype(f32) * valid         # [TE, N]
        oh_dst = (node_ids == dst).astype(f32) * valid         # [TE, N]

        w4e = jnp.dot(ef, w_ref[:, F4:F5], preferred_element_type=f32)
        # Fused gathers via one-hot matmuls (64-lane RHS each).
        g_src = jnp.dot(oh_src, tab_ref[:, 0:F2],
                        preferred_element_type=f32)            # [W0h|W3h][src]
        g_dst = jnp.dot(oh_dst, tab_ref[:, F2:F4],
                        preferred_element_type=f32)            # [W1h|maxpd][dst]
        w0h_e, w3h_e = g_src[:, 0:F], g_src[:, F:F2]
        w1h_e, max_e = g_dst[:, 0:F], g_dst[:, F:F2]
        e_tmp = w0h_e + w1h_e + w4e                            # [TE, F]

        # ------------- phase 0: accumulate -------------
        @pl.when(p == 0)
        def _accumulate():
            ez = jnp.exp(ef - max_e)                           # per-dst-max stabilized
            payload = jnp.concatenate([ez, w3h_e * ez], axis=1)    # [TE, 2F]
            # Fused scatter-add over destinations: oh_dst^T @ [ez | W3h[src]*ez]
            acc_ref[...] += lax.dot_general(
                oh_dst, payload, (((0,), (0,)), ((), ())),
                preferred_element_type=f32)
            # One-pass edge BatchNorm statistics.
            ebn_ref[0:1, :] += jnp.sum(e_tmp, axis=0, keepdims=True)
            ebn_ref[1:2, :] += jnp.sum(e_tmp * e_tmp, axis=0, keepdims=True)

        # ------------- phase boundary: finalize stats + node update -------------
        @pl.when(jnp.logical_and(p == 1, t == 0))
        def _finalize():
            mu = ebn_ref[0:1, :] * inv_E
            var = ebn_ref[1:2, :] * inv_E - mu * mu            # biased variance
            scale = bnp_ref[0:1, :] * lax.rsqrt(var + eps)     # gamma_e / std
            ebn_ref[0:1, :] = scale                            # reuse scratch as
            ebn_ref[1:2, :] = bnp_ref[1:2, :] - mu * scale     # (scale, shift)

            sumpd = acc_ref[:, 0:F]
            numer = acc_ref[:, F:F2]
            n_tmp = jnp.where(sumpd > 0.0, numer / sumpd, 0.0)  # isolated nodes -> 0
            nf = nf_ref[...]
            w2h = jnp.dot(nf, w_ref[:, F3:F4], preferred_element_type=f32)
            h_pre = n_tmp + w2h
            mu_n = jnp.mean(h_pre, axis=0, keepdims=True)
            var_n = jnp.mean((h_pre - mu_n) ** 2, axis=0, keepdims=True)
            h_bn = ((h_pre - mu_n) * lax.rsqrt(var_n + eps)
                    * bnp_ref[2:3, :] + bnp_ref[3:4, :])
            new_h_ref[...] = jnp.maximum(h_bn, 0.0) + nf

        # ------------- phase 1: emit edge output -------------
        @pl.when(p == 1)
        def _emit_edges():
            e_bn = e_tmp * ebn_ref[0:1, :] + ebn_ref[1:2, :]
            new_e_ref[...] = jnp.maximum(e_bn, 0.0) + ef

    return kernel


def tspconv(n_feat, e_feat, src, dst, wt, gamma_e, beta_e, gamma_n, beta_n,
            *, edge_tile=512):
    """TSPConv forward.

    wt: [5, F, F] stacked *transposed* Linear weights (y = x @ wt[i]).
    Returns (new_h [N,F], new_e [E,F]).
    """
    N, F = n_feat.shape
    E = e_feat.shape[0]
    assert edge_tile % 8 == 0

    TE = min(edge_tile, pl.cdiv(E, 8) * 8)
    T = pl.cdiv(E, TE)
    E_pad = T * TE

    # --- light host-side prep (no O(E*N) structures) ---
    # per-destination softmax max; -inf (no incoming edges) sanitized to 0 so the
    # one-hot matmul gather never multiplies 0 * inf.
    maxpd = jax.ops.segment_max(e_feat, dst, num_segments=N)
    maxpd = jnp.where(jnp.isfinite(maxpd), maxpd, 0.0).astype(jnp.float32)

    # weights packed as [W0t | W3t | W1t | W2t | W4t]  -> one resident [F, 5F] slab
    w_cat = jnp.concatenate([wt[0], wt[3], wt[1], wt[2], wt[4]], axis=1)
    bnp = jnp.stack([gamma_e, beta_e, gamma_n, beta_n]).astype(jnp.float32)  # [4, F]

    e_pad = jnp.pad(e_feat, ((0, E_pad - E), (0, 0)))
    src_pad = jnp.pad(src.astype(jnp.int32), (0, E_pad - E)).reshape(E_pad, 1)
    dst_pad = jnp.pad(dst.astype(jnp.int32), (0, E_pad - E)).reshape(E_pad, 1)

    kernel = _make_kernel(N, F, TE, E)

    # new_e blocks only advance during phase 1 (avoids garbage writebacks in phase 0)
    new_e_map = lambda p, t: (jnp.where(p == 1, t, 0), 0)

    new_h, new_e_pad = pl.pallas_call(
        kernel,
        out_shape=(jax.ShapeDtypeStruct((N, F), jnp.float32),
                   jax.ShapeDtypeStruct((E_pad, F), jnp.float32)),
        grid=(2, T),
        in_specs=[
            pl.BlockSpec((TE, F), lambda p, t: (t, 0)),      # e_feat tile (streamed)
            pl.BlockSpec((TE, 1), lambda p, t: (t, 0)),      # src ids (streamed)
            pl.BlockSpec((TE, 1), lambda p, t: (t, 0)),      # dst ids (streamed)
            pl.BlockSpec((N, F), lambda p, t: (0, 0)),       # n_feat     (resident)
            pl.BlockSpec((N, F), lambda p, t: (0, 0)),       # maxpd      (resident)
            pl.BlockSpec((F, 5 * F), lambda p, t: (0, 0)),   # weights    (resident)
            pl.BlockSpec((4, F), lambda p, t: (0, 0)),       # BN affine  (resident)
        ],
        out_specs=(
            pl.BlockSpec((N, F), lambda p, t: (0, 0)),       # new_h (resident)
            pl.BlockSpec((TE, F), new_e_map),                # new_e tiles
        ),
        scratch_shapes=[
            pltpu.VMEM((N, 4 * F), jnp.float32),   # node table [W0h|W3h|W1h|maxpd]
            pltpu.VMEM((N, 2 * F), jnp.float32),   # accumulators [sumpd | numer]
            pltpu.VMEM((2, F), jnp.float32),       # edge-BN sums -> (scale, shift)
        ],
        compiler_params=pltpu.CompilerParams(
            dimension_semantics=("arbitrary", "arbitrary"),
            vmem_limit_bytes=64 * 1024 * 1024),
    )(e_pad, src_pad, dst_pad, n_feat, maxpd, w_cat, bnp)

    return new_h, new_e_pad[:E]


def tspconv_ref(n_feat, e_feat, src, dst, wt, gamma_e, beta_e, gamma_n, beta_n):
    """Pure-JAX reference with segment ops (mirrors the DGL semantics)."""
    N, F = n_feat.shape

    def bn(x, g, b):
        mu = x.mean(0, keepdims=True)
        var = ((x - mu) ** 2).mean(0, keepdims=True)
        return (x - mu) / jnp.sqrt(var + EPS) * g + b

    w0h, w1h, w2h, w3h = (n_feat @ wt[i] for i in range(4))
    w4e = e_feat @ wt[4]

    e_tmp = w0h[src] + w1h[dst] + w4e
    new_e = jax.nn.relu(bn(e_tmp, gamma_e, beta_e)) + e_feat

    maxpd = jax.ops.segment_max(e_feat, dst, num_segments=N)
    ez = jnp.exp(e_feat - maxpd[dst])
    sumpd = jax.ops.segment_sum(ez, dst, num_segments=N)
    a = ez / sumpd[dst]
    n_tmp = jax.ops.segment_sum(w3h[src] * a, dst, num_segments=N)
    new_h = jax.nn.relu(bn(n_tmp + w2h, gamma_n, beta_n)) + n_feat
    return new_h, new_e


if __name__ == "__main__":
    N, E, F = 8, 20, 32  # nodes, edges, in_feats (E not a tile multiple -> exercises masking)

    key = jax.random.PRNGKey(0)
    k_n, k_e, k_w, k_s, k_d = jax.random.split(key, 5)

    n_feat = jax.random.normal(k_n, (N, F), dtype=jnp.float32)
    e_feat = jax.random.normal(k_e, (E, F), dtype=jnp.float32)
    src = jax.random.randint(k_s, (E,), 0, N)
    dst = jax.random.randint(k_d, (E,), 0, N)

    # 5 bias-free Linear(in_feats, in_feats) layers -> store W.T, stacked [5, F, F]
    wt = 0.1 * jax.random.normal(k_w, (5, F, F), dtype=jnp.float32)

    # BatchNorm1d(affine=True, track_running_stats=False) initial parameters
    gamma_e = jnp.ones((F,), jnp.float32)
    beta_e = jnp.zeros((F,), jnp.float32)
    gamma_n = jnp.ones((F,), jnp.float32)
    beta_n = jnp.zeros((F,), jnp.float32)

    new_h, new_e = tspconv(n_feat, e_feat, src, dst, wt,
                           gamma_e, beta_e, gamma_n, beta_n, edge_tile=8)
    jax.block_until_ready((new_h, new_e))

    ref_h, ref_e = tspconv_ref(n_feat, e_feat, src, dst, wt,
                               gamma_e, beta_e, gamma_n, beta_n)
    assert jnp.allclose(new_h, ref_h, atol=1e-4, rtol=1e-4), "node output mismatch"
    assert jnp.allclose(new_e, ref_e, atol=1e-4, rtol=1e-4), "edge output mismatch"

    print("KERNEL_OK")
</pallas_src>

<mosaic_0001>
module attributes {stable_mosaic.version = 11 : i64} {
  func.func @kernel(%arg0: i32, %arg1: i32, %arg2: memref<8x32xf32, #tpu.memory_space<vmem>>, %arg3: memref<8x1xi32, #tpu.memory_space<vmem>>, %arg4: memref<8x1xi32, #tpu.memory_space<vmem>>, %arg5: memref<8x32xf32, #tpu.memory_space<vmem>>, %arg6: memref<8x32xf32, #tpu.memory_space<vmem>>, %arg7: memref<32x160xf32, #tpu.memory_space<vmem>>, %arg8: memref<4x32xf32, #tpu.memory_space<vmem>>, %arg9: memref<8x32xf32, #tpu.memory_space<vmem>>, %arg10: memref<8x32xf32, #tpu.memory_space<vmem>>, %arg11: memref<8x128xf32, #tpu.memory_space<vmem>>, %arg12: memref<8x64xf32, #tpu.memory_space<vmem>>, %arg13: memref<2x32xf32, #tpu.memory_space<vmem>>) attributes {dimension_semantics = [#tpu.dimension_semantics<arbitrary>, #tpu.dimension_semantics<arbitrary>], iteration_bounds = array<i64: 2, 3>, scalar_prefetch = 0 : i64, scratch_operands = 3 : i64, tpu.core_type = #tpu.core_type<tc>, window_params = [{transform_indices = @transform_0, window_bounds = array<i64: 8, 32>}, {transform_indices = @transform_1, window_bounds = array<i64: 8, 1>}, {transform_indices = @transform_2, window_bounds = array<i64: 8, 1>}, {pipeline_mode = #tpu.pipeline_mode<synchronous>, transform_indices = @transform_3, window_bounds = array<i64: 8, 32>}, {pipeline_mode = #tpu.pipeline_mode<synchronous>, transform_indices = @transform_4, window_bounds = array<i64: 8, 32>}, {pipeline_mode = #tpu.pipeline_mode<synchronous>, transform_indices = @transform_5, window_bounds = array<i64: 32, 160>}, {pipeline_mode = #tpu.pipeline_mode<synchronous>, transform_indices = @transform_6, window_bounds = array<i64: 4, 32>}, {pipeline_mode = #tpu.pipeline_mode<synchronous>, transform_indices = @transform_7, window_bounds = array<i64: 8, 32>}, {transform_indices = @transform_8, window_bounds = array<i64: 8, 32>}]} {
    %c0_i32 = arith.constant 0 : i32
    %0 = arith.cmpi eq, %arg0, %c0_i32 : i32
    %c0_i32_0 = arith.constant 0 : i32
    %1 = arith.cmpi eq, %arg1, %c0_i32_0 : i32
    %2 = arith.andi %0, %1 : i1
    %3 = arith.extui %2 : i1 to i32
    %c0_i32_1 = arith.constant 0 : i32
    %4 = arith.cmpi ne, %3, %c0_i32_1 : i32
    scf.if %4 {
      %c0_19 = arith.constant 0 : index
      %c0_20 = arith.constant 0 : index
      %52 = vector.load %arg5[%c0_19, %c0_20] : memref<8x32xf32, #tpu.memory_space<vmem>>, vector<8x32xf32>
      %c0_21 = arith.constant 0 : index
      %c0_22 = arith.constant 0 : index
      %53 = vector.load %arg7[%c0_21, %c0_22] : memref<32x160xf32, #tpu.memory_space<vmem>>, vector<32x96xf32>
      %cst_23 = arith.constant dense<0.000000e+00> : vector<8x96xf32>
      %54 = tpu.matmul %52, %53, %cst_23 {dimension_numbers = #tpu.dot_dimension_numbers<[1], [0], [0], [1], [0, 0, 1, 1], [], []>} : vector<8x32xf32>, vector<32x96xf32>, vector<8x96xf32> -> vector<8x96xf32>
      %c0_24 = arith.constant 0 : index
      %c0_25 = arith.constant 0 : index
      %55 = vector.load %arg11[%c0_24, %c0_25] : memref<8x128xf32, #tpu.memory_space<vmem>>, vector<8x96xf32>
      tpu.vector_store %arg11[%c0_24, %c0_25], %54 {strides = array<i32>} : memref<8x128xf32, #tpu.memory_space<vmem>>, vector<8x96xf32>,
      %c0_26 = arith.constant 0 : index
      %c0_27 = arith.constant 0 : index
      %56 = vector.load %arg6[%c0_26, %c0_27] : memref<8x32xf32, #tpu.memory_space<vmem>>, vector<8x32xf32>
      %c0_28 = arith.constant 0 : index
      %c96 = arith.constant 96 : index
      %57 = vector.load %arg11[%c0_28, %c96] : memref<8x128xf32, #tpu.memory_space<vmem>>, vector<8x32xf32>
      tpu.vector_store %arg11[%c0_28, %c96], %56 {strides = array<i32>} : memref<8x128xf32, #tpu.memory_space<vmem>>, vector<8x32xf32>,
      %cst_29 = arith.constant 0.000000e+00 : f32
      %58 = vector.broadcast %cst_29 : f32 to vector<8x64xf32>
      %c0_30 = arith.constant 0 : index
      %c0_31 = arith.constant 0 : index
      %59 = vector.load %arg12[%c0_30, %c0_31] : memref<8x64xf32, #tpu.memory_space<vmem>>, vector<8x64xf32>
      tpu.vector_store %arg12[%c0_30, %c0_31], %58 {strides = array<i32>} : memref<8x64xf32, #tpu.memory_space<vmem>>, vector<8x64xf32>,
      %cst_32 = arith.constant 0.000000e+00 : f32
      %60 = vector.broadcast %cst_32 : f32 to vector<2x32xf32>
      %c0_33 = arith.constant 0 : index
      %c0_34 = arith.constant 0 : index
      %61 = vector.load %arg13[%c0_33, %c0_34] : memref<2x32xf32, #tpu.memory_space<vmem>>, vector<2x32xf32>
      tpu.vector_store %arg13[%c0_33, %c0_34], %60 {strides = array<i32>} : memref<2x32xf32, #tpu.memory_space<vmem>>, vector<2x32xf32>,
    } else {
    }
    %c0 = arith.constant 0 : index
    %c0_2 = arith.constant 0 : index
    %5 = vector.load %arg2[%c0, %c0_2] : memref<8x32xf32, #tpu.memory_space<vmem>>, vector<8x32xf32>
    %c0_3 = arith.constant 0 : index
    %c0_4 = arith.constant 0 : index
    %6 = vector.load %arg3[%c0_3, %c0_4] : memref<8x1xi32, #tpu.memory_space<vmem>>, vector<8x1xi32>
    %c0_5 = arith.constant 0 : index
    %c0_6 = arith.constant 0 : index
    %7 = vector.load %arg4[%c0_5, %c0_6] : memref<8x1xi32, #tpu.memory_space<vmem>>, vector<8x1xi32>
    %8 = tpu.iota {dimensions = array<i32: 1>} : vector<8x8xi32>
    %9 = tpu.iota {dimensions = array<i32: 0>} : vector<8x1xi32>
    %c8_i32 = arith.constant 8 : i32
    %10 = arith.muli %arg1, %c8_i32 : i32
    %11 = vector.broadcast %10 : i32 to vector<8x1xi32>
    %12 = arith.addi %11, %9 : vector<8x1xi32>
    %c20_i32 = arith.constant 20 : i32
    %13 = vector.broadcast %c20_i32 : i32 to vector<8x1xi32>
    %14 = arith.cmpi slt, %12, %13 : vector<8x1xi32>
    %15 = arith.extui %14 : vector<8x1xi1> to vector<8x1xi32>
    %16 = arith.sitofp %15 : vector<8x1xi32> to vector<8x1xf32>
    %17 = vector.broadcast %6 : vector<8x1xi32> to vector<8x8xi32>
    %18 = arith.cmpi eq, %8, %17 : vector<8x8xi32>
    %19 = arith.extui %18 : vector<8x8xi1> to vector<8x8xi32>
    %20 = arith.sitofp %19 : vector<8x8xi32> to vector<8x8xf32>
    %21 = vector.broadcast %16 : vector<8x1xf32> to vector<8x8xf32>
    %22 = arith.mulf %20, %21 : vector<8x8xf32>
    %23 = vector.broadcast %7 : vector<8x1xi32> to vector<8x8xi32>
    %24 = arith.cmpi eq, %8, %23 : vector<8x8xi32>
    %25 = arith.extui %24 : vector<8x8xi1> to vector<8x8xi32>
    %26 = arith.sitofp %25 : vector<8x8xi32> to vector<8x8xf32>
    %27 = vector.broadcast %16 : vector<8x1xf32> to vector<8x8xf32>
    %28 = arith.mulf %26, %27 : vector<8x8xf32>
    %c0_7 = arith.constant 0 : index
    %c128 = arith.constant 128 : index
    %29 = vector.load %arg7[%c0_7, %c128] : memref<32x160xf32, #tpu.memory_space<vmem>>, vector<32x32xf32>
    %cst = arith.constant dense<0.000000e+00> : vector<8x32xf32>
    %30 = tpu.matmul %5, %29, %cst {dimension_numbers = #tpu.dot_dimension_numbers<[1], [0], [0], [1], [0, 0, 1, 1], [], []>} : vector<8x32xf32>, vector<32x32xf32>, vector<8x32xf32> -> vector<8x32xf32>
    %c0_8 = arith.constant 0 : index
    %c0_9 = arith.constant 0 : index
    %31 = vector.load %arg11[%c0_8, %c0_9] : memref<8x128xf32, #tpu.memory_space<vmem>>, vector<8x64xf32>
    %cst_10 = arith.constant dense<0.000000e+00> : vector<8x64xf32>
    %32 = tpu.matmul %22, %31, %cst_10 {dimension_numbers = #tpu.dot_dimension_numbers<[1], [0], [0], [1], [0, 0, 1, 1], [], []>} : vector<8x8xf32>, vector<8x64xf32>, vector<8x64xf32> -> vector<8x64xf32>
    %c0_11 = arith.constant 0 : index
    %c64 = arith.constant 64 : index
    %33 = vector.load %arg11[%c0_11, %c64] : memref<8x128xf32, #tpu.memory_space<vmem>>, vector<8x64xf32>
    %cst_12 = arith.constant dense<0.000000e+00> : vector<8x64xf32>
    %34 = tpu.matmul %28, %33, %cst_12 {dimension_numbers = #tpu.dot_dimension_numbers<[1], [0], [0], [1], [0, 0, 1, 1], [], []>} : vector<8x8xf32>, vector<8x64xf32>, vector<8x64xf32> -> vector<8x64xf32>
    %35 = vector.extract_strided_slice %32 {offsets = [0, 0], sizes = [8, 32], strides = [1, 1]} : vector<8x64xf32> to vector<8x32xf32>
    %36 = vector.extract_strided_slice %32 {offsets = [0, 32], sizes = [8, 32], strides = [1, 1]} : vector<8x64xf32> to vector<8x32xf32>
    %37 = vector.extract_strided_slice %34 {offsets = [0, 0], sizes = [8, 32], strides = [1, 1]} : vector<8x64xf32> to vector<8x32xf32>
    %38 = vector.extract_strided_slice %34 {offsets = [0, 32], sizes = [8, 32], strides = [1, 1]} : vector<8x64xf32> to vector<8x32xf32>
    %39 = arith.addf %35, %37 : vector<8x32xf32>
    %40 = arith.addf %39, %30 : vector<8x32xf32>
    %c0_i32_13 = arith.constant 0 : i32
    %41 = arith.cmpi eq, %arg0, %c0_i32_13 : i32
    %42 = arith.extui %41 : i1 to i32
    %c0_i32_14 = arith.constant 0 : i32
    %43 = arith.cmpi ne, %42, %c0_i32_14 : i32
    scf.if %43 {
      %52 = arith.subf %5, %38 : vector<8x32xf32>
      %53 = math.exp %52 : vector<8x32xf32>
      %54 = arith.mulf %36, %53 : vector<8x32xf32>
      %55 = tpu.concatenate %53, %54 in 1 : vector<8x32xf32>, vector<8x32xf32> -> vector<8x64xf32>
      %c0_19 = arith.constant 0 : index
      %c0_20 = arith.constant 0 : index
      %56 = vector.load %arg12[%c0_19, %c0_20] : memref<8x64xf32, #tpu.memory_space<vmem>>, vector<8x64xf32>
      %cst_21 = arith.constant dense<0.000000e+00> : vector<8x64xf32>
      %57 = tpu.matmul %28, %55, %cst_21 {dimension_numbers = #tpu.dot_dimension_numbers<[0], [0], [1], [1], [0, 1, 1, 1], [], []>} : vector<8x8xf32>, vector<8x64xf32>, vector<8x64xf32> -> vector<8x64xf32>
      %58 = arith.addf %56, %57 : vector<8x64xf32>
      %c0_22 = arith.constant 0 : index
      %c0_23 = arith.constant 0 : index
      %59 = vector.load %arg12[%c0_22, %c0_23] : memref<8x64xf32, #tpu.memory_space<vmem>>, vector<8x64xf32>
      tpu.vector_store %arg12[%c0_22, %c0_23], %58 {strides = array<i32>} : memref<8x64xf32, #tpu.memory_space<vmem>>, vector<8x64xf32>,
      %c0_24 = arith.constant 0 : index
      %c0_25 = arith.constant 0 : index
      %60 = vector.load %arg13[%c0_24, %c0_25] : memref<2x32xf32, #tpu.memory_space<vmem>>, vector<1x32xf32>
      %cst_26 = arith.constant dense<0.000000e+00> : vector<32xf32>
      %61 = vector.multi_reduction <add>, %40, %cst_26 [0] : vector<8x32xf32> to vector<32xf32>
      %62 = vector.shape_cast %61 : vector<32xf32> to vector<1x32xf32>
      %63 = arith.addf %60, %62 : vector<1x32xf32>
      %c0_27 = arith.constant 0 : index
      %c0_28 = arith.constant 0 : index
      %64 = vector.load %arg13[%c0_27, %c0_28] : memref<2x32xf32, #tpu.memory_space<vmem>>, vector<1x32xf32>
      tpu.vector_store %arg13[%c0_27, %c0_28], %63 {strides = array<i32>} : memref<2x32xf32, #tpu.memory_space<vmem>>, vector<1x32xf32>,
      %c1 = arith.constant 1 : index
      %c0_29 = arith.constant 0 : index
      %65 = vector.load %arg13[%c1, %c0_29] : memref<2x32xf32, #tpu.memory_space<vmem>>, vector<1x32xf32>
      %66 = arith.mulf %40, %40 : vector<8x32xf32>
      %cst_30 = arith.constant dense<0.000000e+00> : vector<32xf32>
      %67 = vector.multi_reduction <add>, %66, %cst_30 [0] : vector<8x32xf32> to vector<32xf32>
      %68 = vector.shape_cast %67 : vector<32xf32> to vector<1x32xf32>
      %69 = arith.addf %65, %68 : vector<1x32xf32>
      %c1_31 = arith.constant 1 : index
      %c0_32 = arith.constant 0 : index
      %70 = vector.load %arg13[%c1_31, %c0_32] : memref<2x32xf32, #tpu.memory_space<vmem>>, vector<1x32xf32>
      tpu.vector_store %arg13[%c1_31, %c0_32], %69 {strides = array<i32>} : memref<2x32xf32, #tpu.memory_space<vmem>>, vector<1x32xf32>,
    } else {
    }
    %c1_i32 = arith.constant 1 : i32
    %44 = arith.cmpi eq, %arg0, %c1_i32 : i32
    %c0_i32_15 = arith.constant 0 : i32
    %45 = arith.cmpi eq, %arg1, %c0_i32_15 : i32
    %46 = arith.andi %44, %45 : i1
    %47 = arith.extui %46 : i1 to i32
    %c0_i32_16 = arith.constant 0 : i32
    %48 = arith.cmpi ne, %47, %c0_i32_16 : i32
    scf.if %48 {
      %c0_19 = arith.constant 0 : index
      %c0_20 = arith.constant 0 : index
      %52 = vector.load %arg13[%c0_19, %c0_20] : memref<2x32xf32, #tpu.memory_space<vmem>>, vector<1x32xf32>
      %cst_21 = arith.constant 5.000000e-02 : f32
      %53 = vector.broadcast %cst_21 : f32 to vector<1x32xf32>
      %54 = arith.mulf %52, %53 : vector<1x32xf32>
      %c1 = arith.constant 1 : index
      %c0_22 = arith.constant 0 : index
      %55 = vector.load %arg13[%c1, %c0_22] : memref<2x32xf32, #tpu.memory_space<vmem>>, vector<1x32xf32>
      %cst_23 = arith.constant 5.000000e-02 : f32
      %56 = vector.broadcast %cst_23 : f32 to vector<1x32xf32>
      %57 = arith.mulf %55, %56 : vector<1x32xf32>
      %58 = arith.mulf %54, %54 : vector<1x32xf32>
      %59 = arith.subf %57, %58 : vector<1x32xf32>
      %c0_24 = arith.constant 0 : index
      %c0_25 = arith.constant 0 : index
      %60 = vector.load %arg8[%c0_24, %c0_25] : memref<4x32xf32, #tpu.memory_space<vmem>>, vector<1x32xf32>
      %cst_26 = arith.constant 9.99999974E-6 : f32
      %61 = vector.broadcast %cst_26 : f32 to vector<1x32xf32>
      %62 = arith.addf %59, %61 : vector<1x32xf32>
      %63 = math.rsqrt %62 : vector<1x32xf32>
      %64 = arith.mulf %60, %63 : vector<1x32xf32>
      %c0_27 = arith.constant 0 : index
      %c0_28 = arith.constant 0 : index
      %65 = vector.load %arg13[%c0_27, %c0_28] : memref<2x32xf32, #tpu.memory_space<vmem>>, vector<1x32xf32>
      tpu.vector_store %arg13[%c0_27, %c0_28], %64 {strides = array<i32>} : memref<2x32xf32, #tpu.memory_space<vmem>>, vector<1x32xf32>,
      %c1_29 = arith.constant 1 : index
      %c0_30 = arith.constant 0 : index
      %66 = vector.load %arg8[%c1_29, %c0_30] : memref<4x32xf32, #tpu.memory_space<vmem>>, vector<1x32xf32>
      %67 = arith.mulf %54, %64 : vector<1x32xf32>
      %68 = arith.subf %66, %67 : vector<1x32xf32>
      %c1_31 = arith.constant 1 : index
      %c0_32 = arith.constant 0 : index
      %69 = vector.load %arg13[%c1_31, %c0_32] : memref<2x32xf32, #tpu.memory_space<vmem>>, vector<1x32xf32>
      tpu.vector_store %arg13[%c1_31, %c0_32], %68 {strides = array<i32>} : memref<2x32xf32, #tpu.memory_space<vmem>>, vector<1x32xf32>,
      %c0_33 = arith.constant 0 : index
      %c0_34 = arith.constant 0 : index
      %70 = vector.load %arg12[%c0_33, %c0_34] : memref<8x64xf32, #tpu.memory_space<vmem>>, vector<8x32xf32>
      %c0_35 = arith.constant 0 : index
      %c32 = arith.constant 32 : index
      %71 = vector.load %arg12[%c0_35, %c32] : memref<8x64xf32, #tpu.memory_space<vmem>>, vector<8x32xf32>
      %cst_36 = arith.constant 0.000000e+00 : f32
      %72 = vector.broadcast %cst_36 : f32 to vector<8x32xf32>
      %73 = arith.cmpf ogt, %70, %72 : vector<8x32xf32>
      %74 = arith.divf %71, %70 : vector<8x32xf32>
      %cst_37 = arith.constant 0.000000e+00 : f32
      %75 = vector.broadcast %cst_37 : f32 to vector<8x32xf32>
      %76 = arith.select %73, %74, %75 : vector<8x32xi1>, vector<8x32xf32>
      %c0_38 = arith.constant 0 : index
      %c0_39 = arith.constant 0 : index
      %77 = vector.load %arg5[%c0_38, %c0_39] : memref<8x32xf32, #tpu.memory_space<vmem>>, vector<8x32xf32>
      %c0_40 = arith.constant 0 : index
      %c96 = arith.constant 96 : index
      %78 = vector.load %arg7[%c0_40, %c96] : memref<32x160xf32, #tpu.memory_space<vmem>>, vector<32x32xf32>
      %cst_41 = arith.constant dense<0.000000e+00> : vector<8x32xf32>
      %79 = tpu.matmul %77, %78, %cst_41 {dimension_numbers = #tpu.dot_dimension_numbers<[1], [0], [0], [1], [0, 0, 1, 1], [], []>} : vector<8x32xf32>, vector<32x32xf32>, vector<8x32xf32> -> vector<8x32xf32>
      %80 = arith.addf %76, %79 : vector<8x32xf32>
      %cst_42 = arith.constant dense<0.000000e+00> : vector<32xf32>
      %81 = vector.multi_reduction <add>, %80, %cst_42 [0] : vector<8x32xf32> to vector<32xf32>
      %82 = vector.shape_cast %81 : vector<32xf32> to vector<1x32xf32>
      %cst_43 = arith.constant 8.000000e+00 : f32
      %83 = vector.broadcast %cst_43 : f32 to vector<1x32xf32>
      %84 = arith.divf %82, %83 : vector<1x32xf32>
      %85 = vector.broadcast %84 : vector<1x32xf32> to vector<8x32xf32>
      %86 = arith.subf %80, %85 : vector<8x32xf32>
      %87 = arith.mulf %86, %86 : vector<8x32xf32>
      %cst_44 = arith.constant dense<0.000000e+00> : vector<32xf32>
      %88 = vector.multi_reduction <add>, %87, %cst_44 [0] : vector<8x32xf32> to vector<32xf32>
      %89 = vector.shape_cast %88 : vector<32xf32> to vector<1x32xf32>
      %cst_45 = arith.constant 8.000000e+00 : f32
      %90 = vector.broadcast %cst_45 : f32 to vector<1x32xf32>
      %91 = arith.divf %89, %90 : vector<1x32xf32>
      %92 = vector.broadcast %84 : vector<1x32xf32> to vector<8x32xf32>
      %93 = arith.subf %80, %92 : vector<8x32xf32>
      %cst_46 = arith.constant 9.99999974E-6 : f32
      %94 = vector.broadcast %cst_46 : f32 to vector<1x32xf32>
      %95 = arith.addf %91, %94 : vector<1x32xf32>
      %96 = math.rsqrt %95 : vector<1x32xf32>
      %97 = vector.broadcast %96 : vector<1x32xf32> to vector<8x32xf32>
      %98 = arith.mulf %93, %97 : vector<8x32xf32>
      %c2 = arith.constant 2 : index
      %c0_47 = arith.constant 0 : index
      %99 = vector.load %arg8[%c2, %c0_47] : memref<4x32xf32, #tpu.memory_space<vmem>>, vector<1x32xf32>
      %100 = vector.broadcast %99 : vector<1x32xf32> to vector<8x32xf32>
      %101 = arith.mulf %98, %100 : vector<8x32xf32>
      %c3 = arith.constant 3 : index
      %c0_48 = arith.constant 0 : index
      %102 = vector.load %arg8[%c3, %c0_48] : memref<4x32xf32, #tpu.memory_space<vmem>>, vector<1x32xf32>
      %103 = vector.broadcast %102 : vector<1x32xf32> to vector<8x32xf32>
      %104 = arith.addf %101, %103 : vector<8x32xf32>
      %cst_49 = arith.constant 0.000000e+00 : f32
      %105 = vector.broadcast %cst_49 : f32 to vector<8x32xf32>
      %106 = arith.maximumf %104, %105 : vector<8x32xf32>
      %107 = arith.addf %106, %77 : vector<8x32xf32>
      %c0_50 = arith.constant 0 : index
      %c0_51 = arith.constant 0 : index
      %108 = vector.load %arg9[%c0_50, %c0_51] : memref<8x32xf32, #tpu.memory_space<vmem>>, vector<8x32xf32>
      tpu.vector_store %arg9[%c0_50, %c0_51], %107 {strides = array<i32>} : memref<8x32xf32, #tpu.memory_space<vmem>>, vector<8x32xf32>,
    } else {
    }
    %c1_i32_17 = arith.constant 1 : i32
    %49 = arith.cmpi eq, %arg0, %c1_i32_17 : i32
    %50 = arith.extui %49 : i1 to i32
    %c0_i32_18 = arith.constant 0 : i32
    %51 = arith.cmpi ne, %50, %c0_i32_18 : i32
    scf.if %51 {
      %c0_19 = arith.constant 0 : index
      %c0_20 = arith.constant 0 : index
      %52 = vector.load %arg13[%c0_19, %c0_20] : memref<2x32xf32, #tpu.memory_space<vmem>>, vector<1x32xf32>
      %53 = vector.broadcast %52 : vector<1x32xf32> to vector<8x32xf32>
      %54 = arith.mulf %40, %53 : vector<8x32xf32>
      %c1 = arith.constant 1 : index
      %c0_21 = arith.constant 0 : index
      %55 = vector.load %arg13[%c1, %c0_21] : memref<2x32xf32, #tpu.memory_space<vmem>>, vector<1x32xf32>
      %56 = vector.broadcast %55 : vector<1x32xf32> to vector<8x32xf32>
      %57 = arith.addf %54, %56 : vector<8x32xf32>
      %cst_22 = arith.constant 0.000000e+00 : f32
      %58 = vector.broadcast %cst_22 : f32 to vector<8x32xf32>
      %59 = arith.maximumf %57, %58 : vector<8x32xf32>
      %60 = arith.addf %59, %5 : vector<8x32xf32>
      %c0_23 = arith.constant 0 : index
      %c0_24 = arith.constant 0 : index
      %61 = vector.load %arg10[%c0_23, %c0_24] : memref<8x32xf32, #tpu.memory_space<vmem>>, vector<8x32xf32>
      tpu.vector_store %arg10[%c0_23, %c0_24], %60 {strides = array<i32>} : memref<8x32xf32, #tpu.memory_space<vmem>>, vector<8x32xf32>,
    } else {
    }
    return
  }
  func.func @transform_0(%arg0: i32, %arg1: i32) -> (i32, i32) {
    %c0_i32 = arith.constant 0 : i32
    %c0_i32_0 = arith.constant 0 : i32
    return %arg1, %c0_i32 : i32, i32
  }
  func.func @transform_1(%arg0: i32, %arg1: i32) -> (i32, i32) {
    %c0_i32 = arith.constant 0 : i32
    %c0_i32_0 = arith.constant 0 : i32
    return %arg1, %c0_i32 : i32, i32
  }
  func.func @transform_2(%arg0: i32, %arg1: i32) -> (i32, i32) {
    %c0_i32 = arith.constant 0 : i32
    %c0_i32_0 = arith.constant 0 : i32
    return %arg1, %c0_i32 : i32, i32
  }
  func.func @transform_3(%arg0: i32, %arg1: i32) -> (i32, i32) {
    %c0_i32 = arith.constant 0 : i32
    %c0_i32_0 = arith.constant 0 : i32
    %c0_i32_1 = arith.constant 0 : i32
    return %c0_i32, %c0_i32_0 : i32, i32
  }
  func.func @transform_4(%arg0: i32, %arg1: i32) -> (i32, i32) {
    %c0_i32 = arith.constant 0 : i32
    %c0_i32_0 = arith.constant 0 : i32
    %c0_i32_1 = arith.constant 0 : i32
    return %c0_i32, %c0_i32_0 : i32, i32
  }
  func.func @transform_5(%arg0: i32, %arg1: i32) -> (i32, i32) {
    %c0_i32 = arith.constant 0 : i32
    %c0_i32_0 = arith.constant 0 : i32
    %c0_i32_1 = arith.constant 0 : i32
    return %c0_i32, %c0_i32_0 : i32, i32
  }
  func.func @transform_6(%arg0: i32, %arg1: i32) -> (i32, i32) {
    %c0_i32 = arith.constant 0 : i32
    %c0_i32_0 = arith.constant 0 : i32
    %c0_i32_1 = arith.constant 0 : i32
    return %c0_i32, %c0_i32_0 : i32, i32
  }
  func.func @transform_7(%arg0: i32, %arg1: i32) -> (i32, i32) {
    %c0_i32 = arith.constant 0 : i32
    %c0_i32_0 = arith.constant 0 : i32
    %c0_i32_1 = arith.constant 0 : i32
    return %c0_i32, %c0_i32_0 : i32, i32
  }
  func.func @transform_8(%arg0: i32, %arg1: i32) -> (i32, i32) {
    %c1_i32 = arith.constant 1 : i32
    %0 = arith.cmpi eq, %arg0, %c1_i32 : i32
    %c0_i32 = arith.constant 0 : i32
    %1 = arith.select %0, %arg1, %c0_i32 : i32
    %c0_i32_0 = arith.constant 0 : i32
    %c0_i32_1 = arith.constant 0 : i32
    return %1, %c0_i32_0 : i32, i32
  }
}

</mosaic_0001>

<bundles_post_ra>
// kernel: tpu_custom_call.1
= control target key start
LH: loop header
LB: loop body
LE: loop exit
PB: predicated region body
PF: predicated region fallthrough
CT: control target
= control target key end

     0   :  { %s1562_s0 = inlined_call_operand.vmem [shape: f32[24,32], index: 0, kind: input, shape index: {}]   ;;  %s1563_s1 = inlined_call_operand.vmem [shape: s32[24,1], index: 1, kind: input, shape index: {}]   ;;  %s1564_s2 = inlined_call_operand.vmem [shape: s32[24,1], index: 2, kind: input, shape index: {}]   ;;  %s1565_s3 = inlined_call_operand.vmem [shape: f32[8,32], index: 3, kind: input, shape index: {}]   ;;  %s1566_s4 = inlined_call_operand.vmem [shape: f32[8,32], index: 4, kind: input, shape index: {}]   ;;  %s1567_s5 = inlined_call_operand.hbm [shape: f32[32,160], index: 5, kind: input, shape index: {}]   ;;  %s1568_s6 = inlined_call_operand.vmem [shape: f32[4,32], index: 6, kind: input, shape index: {}]   ;;  %s1569_s7 = inlined_call_operand.hbm [shape: f32[8,32], index: 7, kind: output, shape index: {0}]   ;;  %s1570_s8 = inlined_call_operand.hbm [shape: f32[24,32], index: 8, kind: output, shape index: {1}]  }
   0x1   :  { %1577 = sst [smem:[#allocation19_spill]] %s1567_s5 }
   0x2   :  { %14 = vsyncpa [#allocation6], 0 }
   0x3   :  { %15 = vsyncpa [#allocation7], 0 }
   0x4   :  { %16 = vsyncpa [#allocation10], 0 }
   0x5   :  { %18 = vsyncpa [#allocation10 + $0x1], 0  ;;  %s1310_s27 = smov 0   ;;  %s1312_s28 = smov 0  }
   0x6   :  { %s1314_s29 = smov 0   ;;  %s1316_s30 = smov 0  }
   0x7   :  { %s1318_s9 = smov 0   ;;  %s1320_s10 = smov 0  }
   0x8   :  { %s1322_s11 = smov 0   ;;  %s1324_s12 = smov 0  }
   0x9 LB: > { %1578 = sst [smem:[#allocation14_spill]] %s1241_s10  ;;  %s932_s13 = sadd.s32 4294967295, %s1249_s12   ;;  %s1249_s12 = sphi %s1324_s12, %s24_s12   ;;  %s1245_s11 = sphi %s1322_s11, %s1594_s11   ;;  %s1241_s10 = sphi %s1320_s10, %s1593_s10   ;;  %s1237_s9 = sphi %s1318_s9, %s1592_s9   ;;  %s1233_s30 = sphi %s1316_s30, %s1591_s30   ;;  %s1229_s29 = sphi %s1314_s29, %s1597_s29   ;;  %s1225_s28 = sphi %s1312_s28, %s1596_s28   ;;  %s1221_s27 = sphi %s1310_s27, %s1595_s27  }
   0xa   : > { %1579 = sst [smem:[#allocation15_spill]] %s1245_s11  ;;  %s933_s14 = sadd.s32 4294967294, %s1249_s12  }
   0xb   : > { %s33_s15 = sadd.s32 1, %s1241_s10  ;;  %s36_s16 = sadd.s32 1, %s1245_s11 }
   0xc   : > { %p34_p0 = scmp.ge.s32.totalorder %s33_s15, 3  ;;  %p223_p1 = scmp.eq.s32.totalorder %s1245_s11, 1 }
   0xd   : > { %s230_s17 = sadd.s32 1, %s1229_s29  ;;  %p240_p2 = scmp.ne.s32.totalorder %s1229_s29, %s1225_s28 }
   0xe   : > { %s1599_s15 = smov (%p34_p0, %s33_s15), 0  ;;  %s1601_s16 = smov (!%p34_p0, %s36_s16), %s1245_s11 }
   0xf   : > { %1580 = sst [smem:[#allocation16_spill]] %s1599_s15  ;;  %p38_p3 = scmp.ge.s32.totalorder %s1601_s16, 2 }
  0x10   : > { %s224_s18 = scalar_select %p223_p1, %s1241_s10, 0 }
  0x11   : > { %p1362_p4 = scmp.eq.s32.totalorder %s932_s13, 5  ;;  %p246_p5 = scmp.ne.s32.totalorder %s1225_s28, %s1221_s27 }
  0x12   : > { %p247_p6 = scmp.eq.s32.totalorder %s933_s14, 5  ;;  %s1603_s16 = smov (%p38_p3, %s1601_s16), 0 }
  0x13   : > { %1582 = sst [smem:[#allocation17_spill]] %s1603_s16  ;;  %p1372_p7 = por %p1362_p4, %p240_p2 }
  0x14   : > { %p1376_p8 = por %p247_p6, %p246_p5  ;;  %p225_p9 = scmp.eq.s32.totalorder %s1603_s16, 1 }
  0x15   : > { %p934_p10 = scmp.ge.s32.totalorder %s1249_s12, 1  ;;  %p254_p11 = scmp.lt.s32.totalorder %s1249_s12, 7 }
  0x16   : > { %s1584_s21 = scalar_select %p1376_p8, 1, 0 }
  0x17   : > { %s226_s22 = scalar_select %p225_p9, %s1599_s15, 0 }
  0x18   : > { %1585 = sst [smem:[#allocation18_spill]] %s1584_s21  ;;  %p1384_p12 = pnand %p934_p10, %p254_p11 }
  0x19   : > { %p1388_p13 = scmp.eq.s32.totalorder %s932_s13, 0  ;;  %s227_s25 = ssub.s32 %s224_s18, %s226_s22 }
  0x1a   : > { %s1588_s5 = sld [smem:[#allocation19_spill]]  ;;  %p228_p0 = scmp.eq.s32.totalorder %s227_s25, 0 }
  0x1b   : > { %p971_p1 = pneg %p1384_p12  ;;  %s1251_s15 = smov [#allocation5]  }
  0x1c   : > { %s1398_s16 = scalar_select %p228_p0, %s1229_s29, %s230_s17  }
  0x1d   : > { %s273_s10 = sshll.u32 %s1251_s15, 4  ;;  %p972_p2 = pnand %p1388_p13, %p971_p1  ;;  %s274_s10 = int_to_ptr.vmem [resolvable:$true] %s273_s10 }
  0x1e   : > { %s1252_s13 = smov 256   ;;  %s1253_s21 = smov 16  }
  0x1f   : > { %313 = sbr.rel (%p1384_p12) target bundleno = 1192 (0x4a8), region = 48 }
  0x20   : > { %s271_s11 = sshll.u32 %s1588_s5, 4  ;;  %s272_s11 = int_to_ptr.hbm [resolvable:$true] %s271_s11 }
  0x21   : > { %974 = dma.hbm_to_vmem [thread:$0]  (!%p972_p2), %s272_s11, 1024, %s274_s10, [#allocation6], %s1252_s13, %s1252_s13, %s1253_s21  }
  0x24   : > { %1208 = dma.done.wait (%p1388_p13), [#allocation6], 1024  }
  0x25   : > { %1210 = vsyncadd (%p1388_p13), [#allocation6], 4294966272  ;;  %s1576_s15 = sand.u32 1, %s1225_s28   ;;  %p355_p3 = scmp.lt.s32.totalorder %s1233_s30, 2 }
  0x26   : > { %s1412_s10 = sshll.u32 %s1576_s15, 3  ;;  %p369_p5 = scmp.eq.s32.totalorder %s1237_s9, 0 }
  0x27   : > { %p370_p6 = scmp.eq.s32.totalorder %s1233_s30, 0  ;;  %s354_s15 = scalar_lea.vmem [#allocation9], %s1412_s10 }
  0x28   : > { %s356_s11 = scalar_select %p355_p3, %s1233_s30, 2 }
  0x29   : > { %p371_p9 = pnand %p370_p6, %p369_p5 }
  0x2a   : > { %s1419_s17 = sshll.u32 %s356_s11, 3  ;;  %s1254_s18 = smov (!%p371_p9), 96  }
  0x2b   : > { %s358_s22 = scalar_lea.vmem %s1562_s0, %s1419_s17  ;;  %s362_s25 = scalar_lea.vmem %s1563_s1, %s1419_s17 }
  0x2c   : > { %s366_s13 = scalar_lea.vmem %s1564_s2, %s1419_s17  ;;  %374 = sbr.rel (%p371_p9) target bundleno = 185 (0xb9), region = 56 }
  0x31   : > { %v379_v0 = vld [vmem:[#allocation5 + $0x30] sm:$0xff]  ;;  %v378_v1 = vld [vmem:[#allocation5 + $0x20] sm:$0xff]  ;;  %vm380_vm0 = vcmask 261120   ;;  %vm413_vm1 = vcmask 523264   ;;  %vm415_vm2 = vcmask 254976   ;;  %v1255_v6 = vmov 0.0  }
  0x32   : > { %396 = vmatpush.msra.mxu0 %v379_v0  ;;  %v406_v2 = vld [vmem:[%s1566_s4] sm:$0xff]  ;;  %v376_v4 = vld [vmem:[#allocation5] sm:$0xff]  ;;  %414 = vst.msk [vmem:[#allocation3] sm:$0xff] %vm413_vm1, %v1255_v6  ;;  %vm404_vm3 = vcmask 785408   ;;  %vm411_vm4 = vcmask 1048320  }
  0x33   : > { %v377_v3 = vld [vmem:[#allocation5 + $0x10] sm:$0xff]  ;;  %408 = vrot.lane.b32.xlu0 %v406_v2, %s1254_s18  ;;  %416 = vst.msk [vmem:[#allocation4] sm:$0x3] %vm415_vm2, %v1255_v6 }
  0x34   : > { %397 = vmatpush.msra.mxu0 %v378_v1  ;;  %v375_v5 = vld [vmem:[%s1565_s3] sm:$0xff] }
  0x36   : > { %398 = vmatpush.msra.mxu0 %v377_v3 }
  0x38   : > { %399 = vmatpush.msra.mxu0 %v376_v4 }
  0x39   : > { %943 = vmatmul.msk.f32.vlgmr.msra.gmra.mxu0 %vm380_vm0, %v375_v5 }
  0xa5   : > { %v409_v7 = vpop.permute.xlu0 %408 }
  0xb6   : > { %v401_v8 = vpop.f32.mrf.mxu0 }
  0xb7   : > { %405 = vst.msk [vmem:[#allocation2] sm:$0xff] %vm404_vm3, %v401_v8 }
  0xb8   : > { %412 = vst.msk [vmem:[#allocation2] sm:$0xff] %vm411_vm4, %v409_v7 }
  0xb9 PF: > { %v419_v9 = vld [vmem:[%s366_s13] sm:$0xff]  ;;  %v1256_v11 = vmov 0   ;;  %s1257_s26 = smov 64   ;;  %v447_v13 = vld [vmem:[#allocation5 + $0x38] sm:$0xff]  ;;  %vm448_vm5 = vcmask 261120   ;;  %v420_v18 = vlaneseq  ;;  %s944_s13 = sshll.u32 %s1233_s30, 3 }
  0xba   : > { %v418_v10 = vld [vmem:[%s362_s25] sm:$0xff]  ;;  %1063 = vset.pattern.permute.xlu0 %v1256_v11  ;;  %1064 = vset.pattern.permute.xlu1 %v1256_v11  ;;  %v445_v15 = vld [vmem:[#allocation5 + $0x18] sm:$0xff]  ;;  %v425_v20 = vstv %s944_s13  ;;  %v1258_v25 = vmov 0.0   ;;  %vm473_vm9 = vcmask 64512   ;;  %p951_p10 = scmp.ne.s32.totalorder %s1237_s9, 0 }
  0xbb   : > { %438 = vperm.xlu0 %1063, %v419_v9   ;;  %431 = vperm.xlu1 %1064, %v418_v10   ;;  %v446_v14 = vld [vmem:[#allocation5 + $0x28] sm:$0xff]  ;;  %v423_v19 = vshrl.u32 %v420_v18, 7  ;;  %v421_v22 = vand.u32 127, %v420_v18  ;;  %s1259_s17 = smov (!%p951_p10), 96  }
  0xbc   : > { %464 = vmatpush.msra.mxu0 %v447_v13  ;;  %v444_v16 = vld [vmem:[#allocation5 + $0x8] sm:$0xff] }
  0xbd   : > { %v1450_v17 = vld [vmem:[%s358_s22] sm:$0xff]  ;;  %v426_v21 = vadd.s32 %v425_v20, %v423_v19  ;;  %s1260_s22 = smov (!%p951_p10), 32  }
  0xbe   : > { %465 = vmatpush.msra.mxu0 %v446_v14 }
  0xbf   : > { %v472_v12 = vld [vmem:[#allocation2] sm:$0xff]  ;;  %vm427_vm6 = vcmp.lt.s32.totalorder %v426_v21, 20 }
  0xc0   : > { %492 = vmatpush.msra.mxu1 %v472_v12  ;;  %466 = vmatpush.msra.mxu0 %v445_v15  ;;  %v945_v26 = vsel %vm427_vm6, 1.0, %v1258_v25 }
  0xc2   : > { %467 = vmatpush.msra.mxu0 %v444_v16 }
  0xc3   : > { %498 = vrot.lane.b32.xlu0 %v472_v12, %s1257_s26  ;;  %948 = vmatmul.msk.f32.vlgmr.msra.gmra.mxu0 %vm448_vm5, %v1450_v17 }
 0x12d   : > { %v439_v23 = vpop.permute.xlu0 %438  ;;  %v432_v24 = vpop.permute.xlu1 %431 }
 0x12e   : > { %vm433_vm7 = vcmp.eq.s32.totalorder %v421_v22, %v432_v24  ;;  %vm440_vm8 = vcmp.eq.s32.totalorder %v421_v22, %v439_v23 }
 0x12f   : > { %v946_v27 = vsel %vm433_vm7, 1.0, %v1258_v25  ;;  %v947_v29 = vsel %vm440_vm8, 1.0, %v1258_v25 }
 0x130   : > { %v436_v28 = vmul.f32 %v946_v27, %v945_v26  ;;  %v443_v30 = vmul.f32 %v947_v29, %v945_v26 }
 0x132   : > { %949 = vmatmul.msk.f32.vlgmr.msra.gmra.mxu1 %vm473_vm9, %v436_v28 }
 0x135   : > { %v499_v31 = vpop.permute.xlu0 %498 }
 0x136   : > { %519 = vmatpush.msra.mxu2 %v499_v31 }
 0x137   : > { %950 = vmatmul.msk.f32.vlgmr.msra.gmra.mxu2 %vm473_vm9, %v443_v30 }
 0x140   : > { %v469_v34 = vpop.f32.mrf.mxu0 }
 0x1af   : > { %v494_v32 = vpop.f32.mrf.mxu1 }
 0x1b9   : > { %528 = sbr.rel (%p951_p10) target bundleno = 820 (0x334), region = 60 }
 0x1ba   : > { %v521_v33 = vpop.f32.mrf.mxu2 }
 0x1bb   : > { %v524_v35 = vadd.f32 %v521_v33, %v494_v32 }
 0x1bd   : > { %v1457_v36 = vadd.f32 %v524_v35, %v469_v34 }
 0x1be   : > { %543 = vxpose.xlu1.b32.start.end [1/1] (short) (narrow) %v443_v30, 8  ;;  %530 = vrot.lane.b32.xlu0 %v521_v33, %s1259_s17  ;;  %v601_v60 = vld [vmem:[#allocation4] sm:$0x1]  ;;  %v612_v61 = vld [vmem:[#allocation4 + $0x1] sm:$0x1]  ;;  %vm610_vm10 = vcmask 253952  }
 0x1bf   : > { %v613_v45 = vmul.f32 %v1457_v36, %v1457_v36  ;;  %v602_v46 = vsel %vm448_vm5, %v1457_v36, 0.0  ;;  %v542_v0 = vld [vmem:[#allocation3] sm:$0xff]  ;;  %vm599_vm11 = vcmask 523264  }
 0x1c0   : > { %v603_v48 = vrot.slane %v602_v46, 4 }
 0x1c1   : > { %v614_v47 = vsel %vm448_vm5, %v613_v45, 0.0 }
 0x1c2   : > { %v615_v49 = vrot.slane %v614_v47, 4  ;;  %v604_v50 = vadd.f32 %v603_v48, %v602_v46 }
 0x1c4   : > { %v616_v51 = vadd.f32 %v615_v49, %v614_v47  ;;  %v605_v52 = vrot.slane %v604_v50, 2 }
 0x1c6   : > { %v617_v53 = vrot.slane %v616_v51, 2  ;;  %v606_v54 = vadd.f32 %v605_v52, %v604_v50 }
 0x1c8   : > { %v618_v55 = vadd.f32 %v617_v53, %v616_v51  ;;  %v607_v56 = vrot.slane %v606_v54, 1 }
 0x1ca   : > { %v619_v57 = vrot.slane %v618_v55, 1  ;;  %v608_v58 = vadd.f32 %v607_v56, %v606_v54 }
 0x1cc   : > { %v620_v59 = vadd.f32 %v619_v57, %v618_v55  ;;  %v609_v62 = vadd.f32 %v608_v58, %v601_v60 }
 0x1ce   : > { %v621_v63 = vadd.f32 %v620_v59, %v612_v61  ;;  %611 = vst.msk [vmem:[#allocation4] sm:$0x1] %vm610_vm10, %v609_v62 }
 0x1d0   : > { %622 = vst.msk [vmem:[#allocation4 + $0x1] sm:$0x1] %vm610_vm10, %v621_v63 }
 0x230   : > { %v531_v37 = vpop.permute.xlu0 %530 }
 0x231   : > { %v533_v38 = vsub.f32 %v1450_v17, %v531_v37 }
 0x233   : > { %v534_v39 = vmul.f32 1.442695, %v533_v38 }
 0x235   : > { %1065 = vpow2.f32 %v534_v39 }
 0x23b   : > { %v1066_v40 = vpop.eup %1065 }
 0x23c   : > { %537 = vrot.lane.b32.xlu0 %v1066_v40, %s1260_s22 }
 0x262   : > { %v559_v43 = vpop.trf.xlu1 }
 0x2ae   : > { %v538_v41 = vpop.permute.xlu0 %537 }
 0x2af   : > { %v540_v42 = vmul.f32 %v538_v41, %v494_v32 }
 0x2b1   : > { %v541_v44 = vsel %vm448_vm5, %v1066_v40, %v540_v42 }
 0x2b2   : > { %593 = vmatpush.msra.mxu0 %v541_v44 }
 0x2b3   : > { %952 = vmatmul.msk.f32.vlgmr.msra.gmra.mxu0 %vm473_vm9, %v559_v43 }
 0x330   : > { %v595_v1 = vpop.f32.mrf.mxu0 }
 0x331   : > { %v598_v2 = vadd.f32 %v595_v1, %v542_v0 }
 0x333   : > { %600 = vst.msk [vmem:[#allocation3] sm:$0xff] %vm599_vm11, %v598_v2 }
 0x334 PF: > { %p623_p11 = scmp.eq.s32.totalorder %s1237_s9, 1 }
 0x336   : > { %p624_p12 = pnand %p623_p11, %p370_p6 }
 0x337   : > { %s1261_s11 = smov (!%p624_p12), 32   ;;  %s1262_s14 = smov (!%p624_p12), 96  }
 0x338   : > { %627 = sbr.rel (%p624_p12) target bundleno = 1154 (0x482), region = 64 }
 0x33d   : > { %v1473_v3 = vld [vmem:[#allocation3] sm:$0xff]  ;;  %v682_v4 = vld [vmem:[#allocation5 + $0x20] sm:$0xff]  ;;  %v628_v10 = vld [vmem:[#allocation4] sm:$0x1]  ;;  %vm647_vm15 = vcmask 253952   ;;  %v1263_v50 = vmov 8.0  }
 0x33e   : > { %v683_v5 = vld [vmem:[#allocation5 + $0x30] sm:$0xff]  ;;  %656 = vrot.lane.b32.xlu1 %v1473_v3, %s1261_s11  ;;  %v680_v7 = vld [vmem:[#allocation5] sm:$0xff]  ;;  %v630_v11 = vld [vmem:[#allocation4 + $0x1] sm:$0x1]  ;;  %v629_v12 = vmul.f32 0.05, %v628_v10 }
 0x33f   : > { %v1067_v6 = vpack.i.bf16 %v682_v4, %v683_v5  ;;  %v681_v8 = vld [vmem:[#allocation5 + $0x10] sm:$0xff]  ;;  %v631_v13 = vmul.f32 0.05, %v630_v11  ;;  %v634_v26 = vld [vmem:[%s1568_s6] sm:$0x1]  ;;  %vm654_vm4 = vcmp.gt.f32.partialorder %v1473_v3, 0.0 }
 0x340   : > { %v1072_v9 = vpack.i.bf16 %v680_v7, %v681_v8  ;;  %v632_v14 = vmul.f32 %v629_v12, %v629_v12  ;;  %v649_v33 = vld [vmem:[%s1568_s6 + $0x1] sm:$0x1] }
 0x341   : > { %1068 = vrot.lane.b32.xlu0 %v1067_v6, %s1261_s11  ;;  %v679_v44 = vld [vmem:[%s1565_s3] sm:$0xff] }
 0x342   : > { %v633_v15 = vsub.f32 %v631_v13, %v632_v14 }
 0x344   : > { %v635_v16 = vadd.f32 1e-05, %v633_v15 }
 0x346   : > { %1079 = vrsqrt.f32 %v635_v16  ;;  %vm642_vm12 = vweird.f32 %v635_v16 }
 0x349   : > { %1073 = vrot.lane.b32.xlu0 %v1072_v9, %s1261_s11 }
 0x34c   : > { %v1080_v18 = vpop.eup %1079 }
 0x34d   : > { %v637_v19 = vmul.f32 %v1080_v18, %v635_v16  ;;  %vm643_vm13 = vweird.f32 %v1080_v18 }
 0x34e   : > { %vm644_vm14 = vmor %vm642_vm12, %vm643_vm13 }
 0x34f   : > { %v638_v20 = vmul.f32 %v1080_v18, %v637_v19 }
 0x351   : > { %v639_v22 = vmul.f32 0.5, %v638_v20 }
 0x353   : > { %v640_v24 = vsub.f32 1.5, %v639_v22 }
 0x355   : > { %v641_v27 = vmul.f32 %v1080_v18, %v640_v24 }
 0x357   : > { %v645_v29 = vsel %vm644_vm14, %v1080_v18, %v641_v27 }
 0x358   : > { %v646_v31 = vmul.f32 %v645_v29, %v634_v26  ;;  %v1078_v26 = vld [vmem:[%s1568_s6 + $0x3] ss:$0 sm:$0xff] }
 0x35a   : > { %648 = vst.msk [vmem:[#allocation4] sm:$0x1] %vm647_vm15, %v646_v31  ;;  %v650_v34 = vmul.f32 %v646_v31, %v629_v12 }
 0x35c   : > { %v651_v39 = vsub.f32 %v649_v33, %v650_v34 }
 0x35e   : > { %652 = vst.msk [vmem:[#allocation4 + $0x1] sm:$0x1] %vm647_vm15, %v651_v39 }
 0x3b0   : > { %v657_v21 = vpop.permute.xlu1 %656 }
 0x3b1   : > { %1081 = vrcp.f32 %v657_v21  ;;  %v670_v38 = vand.u32 2147483648, %v657_v21  ;;  %vm664_vm0 = vweird.f32 %v657_v21  ;;  %v668_v42 = vand.u32 2147483647, %v657_v21 }
 0x3b2   : > { %1083 = vrcp.f32 %v1263_v50 }
 0x3b3   : > { %v1069_v23 = vpop.permute.xlu0 %1068  ;;  %v671_v46 = vor.u32 1.1754944e-38, %v670_v38  ;;  %vm669_vm3 = vcmp.eq.f32.partialorder %v668_v42, 8.507059e+37 }
 0x3b4   : > { %v1070_v25 = vunpack.i.l.bf16 %v1069_v23  ;;  %v1071_v28 = vunpack.i.h.bf16 %v1069_v23  ;;  %v1077_v23 = vld [vmem:[%s1568_s6 + $0x2] ss:$0 sm:$0xff] }
 0x3b6   : > { %715 = vmatpush.msra.mxu0 %v1070_v25 }
 0x3b7   : > { %v1082_v30 = vpop.eup %1081 }
 0x3b8   : > { %716 = vmatpush.msra.mxu0 %v1071_v28  ;;  %v660_v32 = vmul.f32 %v1082_v30, %v657_v21  ;;  %vm665_vm1 = vweird.f32 %v1082_v30  ;;  %v1084_v51 = vpop.eup %1083 }
 0x3b9   : > { %vm666_vm2 = vmor %vm664_vm0, %vm665_vm1  ;;  %v732_v53 = vmul.f32 8.0, %v1084_v51  ;;  %vm736_vm6 = vweird.f32 %v1084_v51 }
 0x3ba   : > { %v661_v35 = vsub.f32 1.0, %v660_v32 }
 0x3bb   : > { %v1074_v37 = vpop.permute.xlu0 %1073  ;;  %v733_v57 = vsub.f32 1.0, %v732_v53 }
 0x3bc   : > { %v1075_v40 = vunpack.i.l.bf16 %v1074_v37  ;;  %v662_v41 = vmul.f32 %v1082_v30, %v661_v35  ;;  %v1076_v43 = vunpack.i.h.bf16 %v1074_v37 }
 0x3bd   : > { %v734_v60 = vmul.f32 %v1084_v51, %v733_v57 }
 0x3be   : > { %717 = vmatpush.msra.mxu0 %v1075_v40  ;;  %v663_v45 = vadd.f32 %v1082_v30, %v662_v41 }
 0x3bf   : > { %v735_v63 = vadd.f32 %v1084_v51, %v734_v60 }
 0x3c0   : > { %718 = vmatpush.msra.mxu0 %v1076_v43  ;;  %v667_v47 = vsel %vm666_vm2, %v1082_v30, %v663_v45 }
 0x3c1   : > { %953 = vmatmul.msk.f32.vlgmr.msra.gmra.mxu0 %vm448_vm5, %v679_v44  ;;  %v672_v48 = vsel %vm669_vm3, %v671_v46, %v667_v47  ;;  %v737_v2 = vsel %vm736_vm6, %v1084_v51, %v735_v63 }
 0x3c2   : > { %v673_v49 = vmul.f32 %v672_v48, %v1473_v3 }
 0x3c4   : > { %675 = vrot.lane.b32.xlu1 %v673_v49, %s1262_s14 }
 0x436   : > { %v676_v52 = vpop.permute.xlu1 %675 }
 0x437   : > { %v678_v54 = vsel %vm654_vm4, %v676_v52, 0.0 }
 0x43e   : > { %v720_v55 = vpop.f32.mrf.mxu0 }
 0x43f   : > { %v723_v56 = vadd.f32 %v720_v55, %v678_v54 }
 0x441   : > { %v724_v58 = vsel %vm448_vm5, %v723_v56, 0.0 }
 0x442   : > { %v725_v59 = vrot.slane %v724_v58, 4 }
 0x444   : > { %v726_v61 = vadd.f32 %v725_v59, %v724_v58 }
 0x446   : > { %v727_v62 = vrot.slane %v726_v61, 2 }
 0x448   : > { %v728_v0 = vadd.f32 %v727_v62, %v726_v61 }
 0x44a   : > { %v729_v1 = vrot.slane %v728_v0, 1 }
 0x44c   : > { %v730_v4 = vadd.f32 %v729_v1, %v728_v0 }
 0x44e   : > { %v738_v5 = vmul.f32 %v737_v2, %v730_v4 }
 0x450   : > { %v739_v6 = vsub.f32 %v723_v56, %v738_v5 }
 0x452   : > { %v740_v3 = vmul.f32 %v739_v6, %v739_v6 }
 0x454   : > { %v741_v7 = vsel %vm448_vm5, %v740_v3, 0.0 }
 0x455   : > { %v742_v8 = vrot.slane %v741_v7, 4 }
 0x457   : > { %v743_v9 = vadd.f32 %v742_v8, %v741_v7 }
 0x459   : > { %v744_v10 = vrot.slane %v743_v9, 2 }
 0x45b   : > { %v745_v11 = vadd.f32 %v744_v10, %v743_v9 }
 0x45d   : > { %v746_v12 = vrot.slane %v745_v11, 1 }
 0x45f   : > { %v747_v13 = vadd.f32 %v746_v12, %v745_v11 }
 0x461   : > { %v748_v14 = vmul.f32 %v747_v13, %v737_v2 }
 0x463   : > { %v749_v15 = vadd.f32 1e-05, %v748_v14 }
 0x465   : > { %1085 = vrsqrt.f32 %v749_v15  ;;  %vm756_vm8 = vweird.f32 %v749_v15 }
 0x46b   : > { %v1086_v16 = vpop.eup %1085 }
 0x46c   : > { %v751_v18 = vmul.f32 %v1086_v16, %v749_v15  ;;  %vm757_vm7 = vweird.f32 %v1086_v16 }
 0x46d   : > { %vm758_vm9 = vmor %vm756_vm8, %vm757_vm7 }
 0x46e   : > { %v752_v19 = vmul.f32 %v1086_v16, %v751_v18 }
 0x470   : > { %v753_v20 = vmul.f32 0.5, %v752_v19 }
 0x472   : > { %v754_v21 = vsub.f32 1.5, %v753_v20 }
 0x474   : > { %v755_v22 = vmul.f32 %v1086_v16, %v754_v21 }
 0x476   : > { %v759_v24 = vsel %vm758_vm9, %v1086_v16, %v755_v22 }
 0x477   : > { %v760_v25 = vmul.f32 %v759_v24, %v739_v6 }
 0x479   : > { %v763_v27 = vmul.f32 %v1077_v23, %v760_v25 }
 0x47b   : > { %v766_v28 = vadd.f32 %v1078_v26, %v763_v27 }
 0x47d   : > { %v767_v29 = vmax.f32 %v766_v28, 0.0 }
 0x47f   : > { %v768_v30 = vadd.f32 %v767_v29, %v679_v44 }
 0x481   : > { %769 = vst.msk [vmem:[#allocation8] sm:$0xff] %vm448_vm5, %v768_v30 }
 0x482 PF: > { %p954_p13 = scmp.ne.s32.totalorder %s1237_s9, 1 }
 0x484   : > { %772 = sbr.rel (%p954_p13) target bundleno = 1171 (0x493), region = 68 }
 0x489   : > { %v1087_v31 = vld [vmem:[#allocation4] ss:$0 sm:$0xff]  ;;  %v1088_v32 = vld [vmem:[#allocation4 + $0x1] ss:$0 sm:$0xff] }
 0x48a   : > { %v775_v33 = vmul.f32 %v1087_v31, %v1457_v36 }
 0x48c   : > { %v778_v34 = vadd.f32 %v1088_v32, %v775_v33 }
 0x48e   : > { %v779_v35 = vmax.f32 %v778_v34, 0.0 }
 0x490   : > { %v780_v37 = vadd.f32 %v779_v35, %v1450_v17 }
 0x492   : > { %781 = vst.msk [vmem:[%s354_s15] sm:$0xff] %vm448_vm5, %v780_v37 }
 0x493 PF: > { %s1264_s11 = smov [#allocation8]   ;;  %s795_s5 = sshll.u32 %s1569_s7, 4  ;;  %s796_s5 = int_to_ptr.hbm [resolvable:$true] %s795_s5 }
 0x494   : > { %s793_s18 = sshll.u32 %s1264_s11, 4  ;;  %s809_s24 = sshll.u32 %s354_s15, 4  ;;  %s794_s18 = int_to_ptr.vmem [resolvable:$true] %s793_s18  ;;  %s810_s24 = int_to_ptr.vmem [resolvable:$true] %s809_s24 }
 0x495   : > { %966 = dma.vmem_to_hbm [thread:$0]  (%p1362_p4), %s794_s18, 128, %s796_s5, [#allocation7]  }
 0x496   : > { %s1605_s30 = smov (!%p623_p11, %s1233_s30), 0  ;;  %s1589_s22 = sand.u32 1, %s1225_s28  }
 0x497   : > { %s957_s26 = sshll.u32 %s1605_s30, 3  ;;  %s783_s11 = scalar_lea.sflag [#allocation10], %s1589_s22 }
 0x498   : > { %s807_s13 = scalar_lea.hbm %s1570_s8, %s957_s26  ;;  %s1167_s30 = scalar_lea.hbm %s1570_s8, 24 }
 0x499   : > { %s811_s17 = sshll.u32 %s807_s13, 4  ;;  %s812_s17 = int_to_ptr.hbm [resolvable:$true] %s811_s17 }
 0x49a   : > { %s1161_s21 = sshra.s32 %s812_s17, 4  ;;  %s1162_s21 = int_to_ptr.hbm [resolvable:$true] %s1161_s21 }
 0x49b   : > { %s1163_s23 = scalar_lea.hbm %s1162_s21, 8  ;;  %p1168_p3 = scmp.lt.s32.totalorder %s1162_s21, %s1570_s8 }
 0x49c   : > { %p1164_p0 = scmp.ne.s32.totalorder %s1162_s21, %s1163_s23  ;;  %p1169_p5 = scmp.lt.s32.totalorder %s1167_s30, %s1163_s23 }
 0x49e   : > { %p1165_p1 = pnand %p1164_p0, %p1372_p7  ;;  %p1170_p6 = por %p1169_p5, %p1168_p3 }
 0x4a0   : > { %p1166_p2 = pneg %p1165_p1 }
 0x4a2   : > { %p1171_p9 = pnand %p1170_p6, %p1166_p2 }
 0x4a4   : > { %1174 = shalt.err (!%p1171_p9)
}
 0x4a5   : > { %967 = dma.vmem_to_hbm [thread:$0]  (%p1372_p7), %s810_s24, 128, %s812_s17, %s783_s11  }
 0x4a6   : > { %1212 = dma.done.wait (%p1362_p4), [#allocation7], 128  }
 0x4a7   : > { %1214 = vsyncadd (%p1362_p4), [#allocation7], 4294967168 }
 0x4a8 PF: > { %p983_p10 = scmp.ge.s32.totalorder %s1249_s12, 2  ;;  %s828_s26 = sand.u32 1, %s1221_s27  }
 0x4a9   : > { %s829_s14 = scalar_lea.sflag [#allocation10], %s828_s26 }
 0x4aa   : > { %p976_p11 = pnand %p983_p10, %p1376_p8 }
 0x4ac   : > { %p977_p12 = pneg %p976_p11 }
 0x4ae   : > { %1216 = dma.done.wait (%p977_p12), %s829_s14, 128  }
 0x4af   : > { %1218 = vsyncadd (%p977_p12), %s829_s14, 4294967168  ;;  %s24_s12 = sadd.s32 1, %s1249_s12   ;;  %s1591_s30 = sld [smem:[#allocation14_spill]] }
 0x4b0   : > { %p21_p7 = scmp.ge.s32.totalorder %s24_s12, 8   ;;  %s1592_s9 = sld [smem:[#allocation15_spill]] }
 0x4b1   : > { %s1593_s10 = sld [smem:[#allocation16_spill]]  ;;  %s1595_s27 = smov %s1225_s28 }
 0x4b2   : > { %s1594_s11 = sld [smem:[#allocation17_spill]]  ;;  %s1596_s28 = smov %s1229_s29 }
 0x4b3   : > { %s1597_s29 = smov %s1398_s16  ;;  %23 = sbr.rel (!%p21_p7) target bundleno = 9 (0x9), region = 119 }
 0x4b8   :  { %835 = vsyncpa [#allocation6], 1 }
 0x4b9   :  { %837 = vsyncpa [#allocation6 + $0x1], 1 }
 0x4ba   :  { %838 = vsyncpa [#allocation7], 1 }
 0x4bb   :  { %840 = vsyncpa [#allocation7 + $0x1], 1 }
 0x4bc   :  { %841 = vsyncpa [#allocation10], 1 }
 0x4bd   :  { %843 = vsyncpa [#allocation10 + $0x1], 1 }

</bundles_post_ra>
